<compile_context>
chip_gen: v5e
topology: v5e:2x2
jax: 0.10.0
libtpu: 0.0.40
codegen_flags: <defaults>
</compile_context>

<pallas_src>
import functools

import jax
import jax.numpy as jnp
from jax.experimental import pallas as pl
from jax.experimental.pallas import tpu as pltpu

_MiB = 1024 * 1024


def _physical_vmem_bytes():
    try:
        return int(pltpu.get_tpu_info().vmem_capacity_bytes)
    except Exception:
        return 64 * _MiB  # conservative fallback: v7x per-TensorCore VMEM


_PHYS_VMEM = _physical_vmem_bytes()
_BIG_VMEM = _PHYS_VMEM >= 100 * _MiB  # v5e / v6e (128 MiB) vs v7x (64 MiB)


def _sublane_quantum(dtype):
    # packed sublane tile: 8 rows for 4-byte, 16 for 2-byte, 32 for 1-byte dtypes
    return max(8, 32 // jnp.dtype(dtype).itemsize)


def _pick_tile(total, target, quantum):
    """Largest divisor of `total` that is <= target and a multiple of `quantum`.

    Falls back to the full extent (a full-dim block is always legal; callers
    keep VMEM bounded via an explicit budget loop)."""
    if total <= target:
        return total
    t = (min(target, total) // quantum) * quantum
    while t >= quantum:
        if total % t == 0:
            return t
        t -= quantum
    return total


# --------------------------- tiled projection matmul ---------------------------


def _matmul_kernel(x_ref, w_ref, o_ref, acc_ref):
    # x: (tm, tk), w: (tn, tk) [stored (Cout, K), contracted on K -> no transpose],
    # accumulate f32 across the K grid axis, write once on the last K step.
    @pl.when(pl.program_id(2) == 0)
    def _():
        acc_ref[...] = jnp.zeros_like(acc_ref)

    acc_ref[...] += jax.lax.dot_general(
        x_ref[...], w_ref[...],
        dimension_numbers=(((1,), (1,)), ((), ())),
        preferred_element_type=jnp.float32)

    @pl.when(pl.program_id(2) == pl.num_programs(2) - 1)
    def _():
        o_ref[...] = acc_ref[...].astype(o_ref.dtype)


def pallas_matmul(x, w):
    """x: (R, K), w: (Cout, K)  ->  (R, Cout).  Contracts on K (no weight transpose)."""
    R, K = x.shape
    Cout = w.shape[0]
    esize = jnp.dtype(x.dtype).itemsize
    if _BIG_VMEM:  # 128 MiB parts (v5e / v6e): fatter tiles, fewer K steps
        tm_t, tn_t, tk_t, cap = 1024, 1024, 2048, 96 * _MiB
    else:          # v7x (64 MiB physical): leave headroom for compiler scratch
        tm_t, tn_t, tk_t, cap = 512, 512, 1024, 48 * _MiB
    tm = _pick_tile(R, tm_t, _sublane_quantum(x.dtype))
    tn = _pick_tile(Cout, tn_t, 128)
    tk = _pick_tile(K, tk_t, 128)
    est = 2 * (tm * tk + tn * tk + tm * tn) * esize + tm * tn * 4
    vmem_limit = int(min(max(est + 8 * _MiB, 32 * _MiB), cap))
    grid = (R // tm, Cout // tn, K // tk)
    return pl.pallas_call(
        _matmul_kernel,
        out_shape=jax.ShapeDtypeStruct((R, Cout), x.dtype),
        grid=grid,
        in_specs=[
            pl.BlockSpec((tm, tk), lambda i, j, k: (i, k)),
            pl.BlockSpec((tn, tk), lambda i, j, k: (j, k)),
        ],
        out_specs=pl.BlockSpec((tm, tn), lambda i, j, k: (i, j)),
        scratch_shapes=[pltpu.VMEM((tm, tn), jnp.float32)],
        compiler_params=pltpu.CompilerParams(
            dimension_semantics=("parallel", "parallel", "arbitrary"),
            vmem_limit_bytes=vmem_limit,
        ),
    )(x, w)


# ------------------- fused q-projection + attention + out-projection -------------------


def _attn_kernel(x_ref, kv_ref, wq_ref, wout_ref, o_ref, acc_ref, *, heads):
    # x_ref:    (1, tq, C)           channel-last pixel tile
    # kv_ref:   (1, 2*heads, M, hd)  K heads then V heads (leading-axis per head)
    # wq_ref:   (heads, hd, C)       attention scale pre-folded by the wrapper
    # wout_ref: (heads, C, hd)
    # o_ref:    (1, C, tq)           channel-first, lane-dense output slab
    # acc_ref:  (C, tq) f32 VMEM scratch accumulator
    x = x_ref[0]                                               # (tq, C)

    for h in range(heads):                                     # static head unroll
        # to_q for this head (per-head weight slice -> no lane-offset slicing of q)
        q_h = jax.lax.dot_general(
            x, wq_ref[h], dimension_numbers=(((1,), (1,)), ((), ())),
            preferred_element_type=jnp.float32).astype(x.dtype)   # (tq, hd)

        k_h = kv_ref[0, h]                                     # (M, hd) free slice
        v_h = kv_ref[0, heads + h]                             # (M, hd) free slice

        # sim = q k^T, contracting last dims so K stays in stored layout
        sim = jax.lax.dot_general(
            q_h, k_h, dimension_numbers=(((1,), (1,)), ((), ())),
            preferred_element_type=jnp.float32)                # (tq, M) f32

        # exact softmax statistics in f32
        sim = sim - jnp.max(sim, axis=-1, keepdims=True)
        p = jnp.exp(sim)                                       # un-normalized probs
        inv = pl.reciprocal(jnp.sum(p, axis=-1, keepdims=True), approx=True)

        # PV first, normalize the small (tq, hd) result instead of (tq, M) probs
        out_h = jnp.dot(p.astype(v_h.dtype), v_h,
                        preferred_element_type=jnp.float32)    # (tq, hd) f32
        out_h = (out_h * inv).astype(x.dtype)

        # to_out contribution of this head, produced channel-first (C, tq)
        contrib = jax.lax.dot_general(
            wout_ref[h], out_h, dimension_numbers=(((1,), (1,)), ((), ())),
            preferred_element_type=jnp.float32)                # (C, tq)
        if h == 0:
            acc_ref[...] = contrib
        else:
            acc_ref[...] += contrib

    # single lane-dense (C, tq) store; tq is a multiple of 128 (or the full row)
    o_ref[0] = acc_ref[...].astype(o_ref.dtype)


def _attn_vmem_bytes(tq, C, M, heads, esize):
    hd = C // heads
    return (2 * tq * C * esize        # x blocks (double buffered)
            + 2 * 2 * C * M * esize   # kv blocks
            + 2 * 2 * C * C * esize   # wq + wout blocks
            + 2 * C * tq * esize      # out blocks
            + C * tq * 4              # f32 accumulator scratch
            + 3 * tq * M * 4          # sim / exp f32 temps
            + 4 * tq * max(C, hd) * 4)  # q / out_h temps


# ------------------------------ module wrapper ------------------------------


def efficient_self_attention(x, wq, wkv, wout, *, heads, reduction_ratio,
                             q_tile=1024, compute_dtype=None):
    """x: (B, C, H, W) NCHW; wq/wout: (C, C, 1, 1); wkv: (2C, C, r, r)."""
    B, C, H, W = x.shape
    r = reduction_ratio
    assert C % heads == 0, "dim must be divisible by heads"
    assert H % r == 0 and W % r == 0, "H, W must be divisible by reduction_ratio"
    hd = C // heads
    scale = float(hd) ** -0.5
    Hr, Wr = H // r, W // r
    N, M = H * W, Hr * Wr

    if compute_dtype is not None:  # e.g. jnp.bfloat16 for the bf16 MXU path
        cdt = jnp.dtype(compute_dtype)
        x, wq, wkv, wout = (t.astype(cdt) for t in (x, wq, wkv, wout))
    cdtype = x.dtype
    esize = jnp.dtype(cdtype).itemsize

    # Pre-split weights per head (leading-axis slices in-kernel) and fold the
    # attention scale into the q weight.
    wq_heads = (wq.reshape(C, C) * scale).reshape(heads, hd, C).astype(cdtype)
    wout_heads = wout.reshape(C, heads, hd).transpose(1, 0, 2)        # (heads, C, hd)

    # channel-last pixel sequence for the fused q projection
    # TODO(synk): consume x channel-first inside the kernel to drop this
    # NCHW->NHWC HBM pass (requires flipping the softmax reduction axis).
    x_seq = jnp.transpose(x, (0, 2, 3, 1)).reshape(B, N, C)

    # to_kv: r-strided rxr conv == patchify + tiled matmul (feature order
    # (Cin, r, r) matches wkv.reshape(2C, C*r*r); contracted on dim 1).
    # TODO(synk): the patch extraction is an XLA reshape/transpose pass, not a
    # Pallas kernel; it could be folded into the matmul grid as an extra
    # 'arbitrary' tap axis to avoid re-writing x to HBM.
    patches = (x.reshape(B, C, Hr, r, Wr, r)
                 .transpose(0, 2, 4, 1, 3, 5)
                 .reshape(B * M, C * r * r))
    kv_flat = pallas_matmul(patches, wkv.reshape(2 * C, C * r * r))   # (B*M, 2C)

    # Re-lay out kv as (B, 2*heads, M, hd): per-head K/V become leading-axis
    # slices inside the kernel (no lane-offset slicing of the resident buffer).
    # kv is reduced by r**2, so this small XLA transpose is cheap.
    kv = (kv_flat.reshape(B, M, 2, heads, hd)
                  .transpose(0, 2, 3, 1, 4)
                  .reshape(B, 2 * heads, M, hd))

    # Query tile: it is the lane dim of the channel-first output, so keep it a
    # multiple of 128 (or the full row). Large target amortizes the ~0.35us
    # per-grid-step overhead; shrink while the f32 temps would overflow VMEM.
    budget = (80 if _BIG_VMEM else 40) * _MiB
    tq_target = min(q_tile, N)
    if B == 1 and N >= 256:
        tq_target = min(tq_target, N // 2)  # keep >=2 grid steps for v7x's 2 TCs
    tq = _pick_tile(N, tq_target, 128)
    while tq > 128 and _attn_vmem_bytes(tq, C, M, heads, esize) > budget:
        smaller = _pick_tile(N, tq // 2, 128)
        if smaller >= tq:
            break
        tq = smaller
    vmem_limit = int(min(max(_attn_vmem_bytes(tq, C, M, heads, esize) + 8 * _MiB,
                             32 * _MiB),
                         (96 if _BIG_VMEM else 48) * _MiB))

    kern = functools.partial(_attn_kernel, heads=heads)
    y_cf = pl.pallas_call(
        kern,
        out_shape=jax.ShapeDtypeStruct((B, C, N), cdtype),
        grid=(B, N // tq),
        in_specs=[
            pl.BlockSpec((1, tq, C), lambda b, qi: (b, qi, 0)),            # x tile
            pl.BlockSpec((1, 2 * heads, M, hd), lambda b, qi: (b, 0, 0, 0)),  # kv resident per batch
            pl.BlockSpec((heads, hd, C), lambda b, qi: (0, 0, 0)),         # wq (fetched once)
            pl.BlockSpec((heads, C, hd), lambda b, qi: (0, 0, 0)),         # wout (fetched once)
        ],
        out_specs=pl.BlockSpec((1, C, tq), lambda b, qi: (b, 0, qi)),
        scratch_shapes=[pltpu.VMEM((C, tq), jnp.float32)],
        compiler_params=pltpu.CompilerParams(
            dimension_semantics=("parallel", "parallel"),
            vmem_limit_bytes=vmem_limit,
        ),
    )(x_seq, kv, wq_heads, wout_heads)

    # (B, C, N) -> (B, C, H, W) is a free reshape — no trailing transpose pass.
    return y_cf.reshape(B, C, H, W)


# ------------------------------ pure-JAX reference ------------------------------


def reference(x, wq, wkv, wout, *, heads, reduction_ratio):
    dn = ("NCHW", "OIHW", "NCHW")
    hp = jax.lax.Precision.HIGHEST
    r = reduction_ratio
    B, C, H, W = x.shape
    hd = C // heads
    q = jax.lax.conv_general_dilated(x, wq, (1, 1), "VALID",
                                     dimension_numbers=dn, precision=hp)
    kv = jax.lax.conv_general_dilated(x, wkv, (r, r), "VALID",
                                      dimension_numbers=dn, precision=hp)
    k, v = kv[:, :C], kv[:, C:]

    def rearr(t):
        b, c, h, w = t.shape
        return (t.reshape(b, heads, hd, h, w)
                .transpose(0, 1, 3, 4, 2)
                .reshape(b * heads, h * w, hd))

    qh, kh, vh = rearr(q), rearr(k), rearr(v)
    sim = jnp.einsum("bid,bjd->bij", qh, kh, precision=hp) * (float(hd) ** -0.5)
    attn = jax.nn.softmax(sim, axis=-1)
    out = jnp.einsum("bij,bjd->bid", attn, vh, precision=hp)
    out = (out.reshape(B, heads, H, W, hd)
           .transpose(0, 1, 4, 2, 3)
           .reshape(B, C, H, W))
    return jax.lax.conv_general_dilated(out, wout, (1, 1), "VALID",
                                        dimension_numbers=dn, precision=hp)


# ----------------------------------- main -----------------------------------

if __name__ == "__main__":
    B, dim, H, W = 2, 32, 16, 16
    heads, reduction_ratio = 2, 2

    key = jax.random.PRNGKey(0)
    kx, kq, kkv, ko = jax.random.split(key, 4)
    x = jax.random.normal(kx, (B, dim, H, W), dtype=jnp.float32)
    wq = 0.1 * jax.random.normal(kq, (dim, dim, 1, 1), dtype=jnp.float32)
    wkv = 0.1 * jax.random.normal(
        kkv, (dim * 2, dim, reduction_ratio, reduction_ratio), dtype=jnp.float32)
    wout = 0.1 * jax.random.normal(ko, (dim, dim, 1, 1), dtype=jnp.float32)

    y_ref = reference(x, wq, wkv, wout, heads=heads,
                      reduction_ratio=reduction_ratio)

    # q_tile=128 so the toy size (N = 256) exercises the multi-q-tile path.
    y = efficient_self_attention(x, wq, wkv, wout, heads=heads,
                                 reduction_ratio=reduction_ratio, q_tile=128)
    y = jax.block_until_ready(y)
    assert y.shape == (B, dim, H, W)
    # tolerance covers the EUP approximate reciprocal and MXU f32-pass differences
    assert jnp.allclose(y, y_ref, rtol=1e-2, atol=1e-2), "f32 mismatch vs reference"

    # bf16 operand path (production configuration: bf16 MXU, f32 softmax/accum)
    y_bf16 = efficient_self_attention(x, wq, wkv, wout, heads=heads,
                                      reduction_ratio=reduction_ratio,
                                      q_tile=128, compute_dtype=jnp.bfloat16)
    y_bf16 = jax.block_until_ready(y_bf16).astype(jnp.float32)
    assert y_bf16.shape == (B, dim, H, W)
    assert jnp.allclose(y_bf16, y_ref, rtol=5e-2, atol=5e-2), "bf16 mismatch vs reference"

    print("KERNEL_OK")
</pallas_src>

<mosaic_0001>
module attributes {stable_mosaic.version = 11 : i64} {
  func.func @_matmul_kernel(%arg0: i32, %arg1: i32, %arg2: i32, %arg3: memref<128x128xf32, #tpu.memory_space<vmem>>, %arg4: memref<64x128xf32, #tpu.memory_space<vmem>>, %arg5: memref<128x64xf32, #tpu.memory_space<vmem>>, %arg6: memref<128x64xf32, #tpu.memory_space<vmem>>) attributes {dimension_semantics = [#tpu.dimension_semantics<parallel>, #tpu.dimension_semantics<parallel>, #tpu.dimension_semantics<arbitrary>], iteration_bounds = array<i64: 1, 1, 1>, scalar_prefetch = 0 : i64, scratch_operands = 1 : i64, tpu.core_type = #tpu.core_type<tc>, window_params = [{transform_indices = @transform_0, window_bounds = array<i64: 128, 128>}, {transform_indices = @transform_1, window_bounds = array<i64: 64, 128>}, {transform_indices = @transform_2, window_bounds = array<i64: 128, 64>}]} {
    %c0_i32 = arith.constant 0 : i32
    %0 = arith.cmpi eq, %arg2, %c0_i32 : i32
    %1 = arith.extui %0 : i1 to i32
    %c0_i32_0 = arith.constant 0 : i32
    %2 = arith.cmpi ne, %1, %c0_i32_0 : i32
    scf.if %2 {
      %cst_10 = arith.constant 0.000000e+00 : f32
      %12 = vector.broadcast %cst_10 : f32 to vector<128x64xf32>
      %c0_11 = arith.constant 0 : index
      %c0_12 = arith.constant 0 : index
      %13 = vector.load %arg6[%c0_11, %c0_12] : memref<128x64xf32, #tpu.memory_space<vmem>>, vector<128x64xf32>
      tpu.vector_store %arg6[%c0_11, %c0_12], %12 {strides = array<i32>} : memref<128x64xf32, #tpu.memory_space<vmem>>, vector<128x64xf32>,
    } else {
    }
    %c0 = arith.constant 0 : index
    %c0_1 = arith.constant 0 : index
    %3 = vector.load %arg6[%c0, %c0_1] : memref<128x64xf32, #tpu.memory_space<vmem>>, vector<128x64xf32>
    %c0_2 = arith.constant 0 : index
    %c0_3 = arith.constant 0 : index
    %4 = vector.load %arg3[%c0_2, %c0_3] : memref<128x128xf32, #tpu.memory_space<vmem>>, vector<128x128xf32>
    %c0_4 = arith.constant 0 : index
    %c0_5 = arith.constant 0 : index
    %5 = vector.load %arg4[%c0_4, %c0_5] : memref<64x128xf32, #tpu.memory_space<vmem>>, vector<64x128xf32>
    %cst = arith.constant dense<0.000000e+00> : vector<128x64xf32>
    %6 = tpu.matmul %4, %5, %cst {dimension_numbers = #tpu.dot_dimension_numbers<[1], [1], [0], [0], [0, 0, 1, 0], [], []>} : vector<128x128xf32>, vector<64x128xf32>, vector<128x64xf32> -> vector<128x64xf32>
    %7 = arith.addf %3, %6 : vector<128x64xf32>
    %c0_6 = arith.constant 0 : index
    %c0_7 = arith.constant 0 : index
    %8 = vector.load %arg6[%c0_6, %c0_7] : memref<128x64xf32, #tpu.memory_space<vmem>>, vector<128x64xf32>
    tpu.vector_store %arg6[%c0_6, %c0_7], %7 {strides = array<i32>} : memref<128x64xf32, #tpu.memory_space<vmem>>, vector<128x64xf32>,
    %c0_i32_8 = arith.constant 0 : i32
    %9 = arith.cmpi eq, %arg2, %c0_i32_8 : i32
    %10 = arith.extui %9 : i1 to i32
    %c0_i32_9 = arith.constant 0 : i32
    %11 = arith.cmpi ne, %10, %c0_i32_9 : i32
    scf.if %11 {
      %c0_10 = arith.constant 0 : index
      %c0_11 = arith.constant 0 : index
      %12 = vector.load %arg6[%c0_10, %c0_11] : memref<128x64xf32, #tpu.memory_space<vmem>>, vector<128x64xf32>
      %c0_12 = arith.constant 0 : index
      %c0_13 = arith.constant 0 : index
      %13 = vector.load %arg5[%c0_12, %c0_13] : memref<128x64xf32, #tpu.memory_space<vmem>>, vector<128x64xf32>
      tpu.vector_store %arg5[%c0_12, %c0_13], %12 {strides = array<i32>} : memref<128x64xf32, #tpu.memory_space<vmem>>, vector<128x64xf32>,
    } else {
    }
    return
  }
  func.func @transform_0(%arg0: i32, %arg1: i32, %arg2: i32) -> (i32, i32) {
    %c0_i32 = arith.constant 0 : i32
    return %arg0, %arg2 : i32, i32
  }
  func.func @transform_1(%arg0: i32, %arg1: i32, %arg2: i32) -> (i32, i32) {
    %c0_i32 = arith.constant 0 : i32
    return %arg1, %arg2 : i32, i32
  }
  func.func @transform_2(%arg0: i32, %arg1: i32, %arg2: i32) -> (i32, i32) {
    %c0_i32 = arith.constant 0 : i32
    return %arg0, %arg1 : i32, i32
  }
}

</mosaic_0001>

<bundles_post_ra>
// kernel: tpu_custom_call.1
= control target key start
LH: loop header
LB: loop body
LE: loop exit
PB: predicated region body
PF: predicated region fallthrough
CT: control target
= control target key end

     0   :  { %7 = vsyncpa [#allocation4], 0  ;;  %s446_s0 = inlined_call_operand.hbm [shape: f32[128,128], index: 0, kind: input, shape index: {}]   ;;  %s447_s1 = inlined_call_operand.hbm [shape: f32[64,128], index: 1, kind: input, shape index: {}]   ;;  %s448_s2 = inlined_call_operand.vmem [shape: f32[128,64], index: 2, kind: output, shape index: {}]  }
   0x1   :  { %s13_s11 = sshll.u32 %s446_s0, 4  ;;  %s14_s11 = int_to_ptr.hbm [resolvable:$true] %s13_s11 }
   0x2   :  { %8 = vsyncpa [#allocation6], 0  ;;  %s324_s12 = smov [#allocation3]   ;;  %s26_s16 = sshll.u32 %s447_s1, 4  ;;  %s27_s16 = int_to_ptr.hbm [resolvable:$true] %s26_s16 }
   0x3   :  { %s15_s13 = sshll.u32 %s324_s12, 4  ;;  %s325_s17 = smov 128   ;;  %s16_s13 = int_to_ptr.vmem [resolvable:$true] %s15_s13 }
   0x4   :  { %s326_s18 = smov 8   ;;  %s327_s19 = smov [#allocation5]  }
   0x5   :  { %21 = dma.hbm_to_vmem [thread:$0]  %s14_s11, 2048, %s16_s13, [#allocation4], %s325_s17, %s325_s17, %s326_s18  }
   0x6   :  { %s28_s20 = sshll.u32 %s327_s19, 4  ;;  %s29_s20 = int_to_ptr.vmem [resolvable:$true] %s28_s20 }
   0x7   :  { %34 = dma.hbm_to_vmem [thread:$0]  %s27_s16, 1024, %s29_s20, [#allocation6], %s325_s17, %s325_s17, %s326_s18  }
   0x8   :  { %320 = dma.done.wait [#allocation4], 2048  }
   0x9   :  { %321 = vsyncadd [#allocation4], 4294965248 }
   0xa   :  { %322 = dma.done.wait [#allocation6], 1024  }
   0xb   :  { %323 = vsyncadd [#allocation6], 4294966272  ;;  %v103_v0 = vld [vmem:[#allocation5 + $0x38] sm:$0xff]  ;;  %v102_v1 = vld [vmem:[#allocation5 + $0x30] sm:$0xff]  ;;  %vm47_vm0 = vcmask 523264   ;;  %v328_v8 = vmov 0.0  }
   0xc   :  { %244 = vmatpush.xpose.msra.mxu2 %v103_v0  ;;  %245 = vmatpush.xpose.msra.mxu3 %v103_v0  ;;  %v101_v2 = vld [vmem:[#allocation5 + $0x28] sm:$0xff]  ;;  %v100_v3 = vld [vmem:[#allocation5 + $0x20] sm:$0xff]  ;;  %v99_v4 = vld [vmem:[#allocation5 + $0x18] sm:$0xff]  ;;  %48 = vst.msk [vmem:[#allocation2] sm:$0xff] %vm47_vm0, %v328_v8 }
   0xd   :  { %112 = vmatpush.xpose.msra.mxu0 %v103_v0  ;;  %243 = vmatpush.xpose.msra.mxu1 %v103_v0  ;;  %v98_v5 = vld [vmem:[#allocation5 + $0x10] sm:$0xff]  ;;  %v97_v6 = vld [vmem:[#allocation5 + $0x8] sm:$0xff]  ;;  %v96_v7 = vld [vmem:[#allocation5] sm:$0xff]  ;;  %49 = vst.msk [vmem:[#allocation2 + $0x8] sm:$0xff] %vm47_vm0, %v328_v8 }
   0xe   :  { %50 = vst.msk [vmem:[#allocation2 + $0x10] sm:$0xff] %vm47_vm0, %v328_v8  ;;  %v88_v9 = vld [vmem:[#allocation3 + $0x40] sm:$0xff]  ;;  %v89_v13 = vld [vmem:[#allocation3 + $0x48] sm:$0xff]  ;;  %v90_v17 = vld [vmem:[#allocation3 + $0x50] sm:$0xff] }
   0xf   :  { %v92_v10 = vld [vmem:[#allocation3 + $0x60] sm:$0xff]  ;;  %51 = vst.msk [vmem:[#allocation2 + $0x18] sm:$0xff] %vm47_vm0, %v328_v8  ;;  %v93_v14 = vld [vmem:[#allocation3 + $0x68] sm:$0xff]  ;;  %v94_v18 = vld [vmem:[#allocation3 + $0x70] sm:$0xff] }
  0x10   :  { %247 = vmatpush.xpose.msra.mxu2 %v102_v1  ;;  %248 = vmatpush.xpose.msra.mxu3 %v102_v1  ;;  %v80_v11 = vld [vmem:[#allocation3] sm:$0xff]  ;;  %52 = vst.msk [vmem:[#allocation2 + $0x20] sm:$0xff] %vm47_vm0, %v328_v8  ;;  %v81_v15 = vld [vmem:[#allocation3 + $0x8] sm:$0xff]  ;;  %v82_v19 = vld [vmem:[#allocation3 + $0x10] sm:$0xff] }
  0x11   :  { %113 = vmatpush.xpose.msra.mxu0 %v102_v1  ;;  %246 = vmatpush.xpose.msra.mxu1 %v102_v1  ;;  %v84_v12 = vld [vmem:[#allocation3 + $0x20] sm:$0xff]  ;;  %53 = vst.msk [vmem:[#allocation2 + $0x28] sm:$0xff] %vm47_vm0, %v328_v8  ;;  %v85_v16 = vld [vmem:[#allocation3 + $0x28] sm:$0xff]  ;;  %v86_v20 = vld [vmem:[#allocation3 + $0x30] sm:$0xff] }
  0x12   :  { %54 = vst.msk [vmem:[#allocation2 + $0x30] sm:$0xff] %vm47_vm0, %v328_v8  ;;  %v91_v21 = vld [vmem:[#allocation3 + $0x58] sm:$0xff] }
  0x13   :  { %55 = vst.msk [vmem:[#allocation2 + $0x38] sm:$0xff] %vm47_vm0, %v328_v8  ;;  %v95_v22 = vld [vmem:[#allocation3 + $0x78] sm:$0xff]  ;;  %v64_v25 = vld [vmem:[#allocation2] sm:$0xff] }
  0x14   :  { %250 = vmatpush.xpose.msra.mxu2 %v101_v2  ;;  %251 = vmatpush.xpose.msra.mxu3 %v101_v2  ;;  %56 = vst.msk [vmem:[#allocation2 + $0x40] sm:$0xff] %vm47_vm0, %v328_v8  ;;  %v83_v23 = vld [vmem:[#allocation3 + $0x18] sm:$0xff]  ;;  %v65_v37 = vld [vmem:[#allocation2 + $0x8] sm:$0xff] }
  0x15   :  { %114 = vmatpush.xpose.msra.mxu0 %v101_v2  ;;  %249 = vmatpush.xpose.msra.mxu1 %v101_v2  ;;  %57 = vst.msk [vmem:[#allocation2 + $0x48] sm:$0xff] %vm47_vm0, %v328_v8  ;;  %v87_v24 = vld [vmem:[#allocation3 + $0x38] sm:$0xff]  ;;  %v66_v50 = vld [vmem:[#allocation2 + $0x10] sm:$0xff] }
  0x16   :  { %58 = vst.msk [vmem:[#allocation2 + $0x50] sm:$0xff] %vm47_vm0, %v328_v8 }
  0x17   :  { %59 = vst.msk [vmem:[#allocation2 + $0x58] sm:$0xff] %vm47_vm0, %v328_v8  ;;  %v68_v26 = vld [vmem:[#allocation2 + $0x20] sm:$0xff] }
  0x18   :  { %253 = vmatpush.xpose.msra.mxu2 %v100_v3  ;;  %254 = vmatpush.xpose.msra.mxu3 %v100_v3  ;;  %60 = vst.msk [vmem:[#allocation2 + $0x60] sm:$0xff] %vm47_vm0, %v328_v8  ;;  %v69_v38 = vld [vmem:[#allocation2 + $0x28] sm:$0xff] }
  0x19   :  { %115 = vmatpush.xpose.msra.mxu0 %v100_v3  ;;  %252 = vmatpush.xpose.msra.mxu1 %v100_v3  ;;  %61 = vst.msk [vmem:[#allocation2 + $0x68] sm:$0xff] %vm47_vm0, %v328_v8  ;;  %v70_v55 = vld [vmem:[#allocation2 + $0x30] sm:$0xff]  ;;  %v67_v3 = vld [vmem:[#allocation2 + $0x18] sm:$0xff] }
  0x1a   :  { %62 = vst.msk [vmem:[#allocation2 + $0x70] sm:$0xff] %vm47_vm0, %v328_v8 }
  0x1b   :  { %63 = vst.msk [vmem:[#allocation2 + $0x78] sm:$0xff] %vm47_vm0, %v328_v8  ;;  %v72_v31 = vld [vmem:[#allocation2 + $0x40] sm:$0xff] }
  0x1c   :  { %256 = vmatpush.xpose.msra.mxu2 %v99_v4  ;;  %257 = vmatpush.xpose.msra.mxu3 %v99_v4  ;;  %v73_v45 = vld [vmem:[#allocation2 + $0x48] sm:$0xff] }
  0x1d   :  { %116 = vmatpush.xpose.msra.mxu0 %v99_v4  ;;  %255 = vmatpush.xpose.msra.mxu1 %v99_v4  ;;  %v74_v59 = vld [vmem:[#allocation2 + $0x50] sm:$0xff]  ;;  %v71_v4 = vld [vmem:[#allocation2 + $0x38] sm:$0xff] }
  0x1f   :  { %v76_v32 = vld [vmem:[#allocation2 + $0x60] sm:$0xff] }
  0x20   :  { %259 = vmatpush.xpose.msra.mxu2 %v98_v5  ;;  %260 = vmatpush.xpose.msra.mxu3 %v98_v5  ;;  %v77_v46 = vld [vmem:[#allocation2 + $0x68] sm:$0xff] }
  0x21   :  { %117 = vmatpush.xpose.msra.mxu0 %v98_v5  ;;  %258 = vmatpush.xpose.msra.mxu1 %v98_v5  ;;  %v78_v60 = vld [vmem:[#allocation2 + $0x70] sm:$0xff] }
  0x24   :  { %262 = vmatpush.xpose.msra.mxu2 %v97_v6  ;;  %263 = vmatpush.xpose.msra.mxu3 %v97_v6 }
  0x25   :  { %118 = vmatpush.xpose.msra.mxu0 %v97_v6  ;;  %261 = vmatpush.xpose.msra.mxu1 %v97_v6 }
  0x28   :  { %265 = vmatpush.xpose.msra.mxu2 %v96_v7  ;;  %266 = vmatpush.xpose.msra.mxu3 %v96_v7 }
  0x29   :  { %119 = vmatpush.xpose.msra.mxu0 %v96_v7  ;;  %264 = vmatpush.xpose.msra.mxu1 %v96_v7 }
  0x2b   :  { %144 = vmatmul.f32.vlgmr.msra.gmra.mxu2 %v88_v9  ;;  %156 = vmatmul.f32.vlgmr.msra.gmra.mxu3 %v92_v10 }
  0x2c   :  { %120 = vmatmul.f32.vlgmr.msra.gmra.mxu0 %v80_v11  ;;  %132 = vmatmul.f32.vlgmr.msra.gmra.mxu1 %v84_v12  ;;  %v75_v12 = vld [vmem:[#allocation2 + $0x58] sm:$0xff] }
  0x33   :  { %147 = vmatmul.f32.gmra.mxu2 %v89_v13  ;;  %159 = vmatmul.f32.gmra.mxu3 %v93_v14  ;;  %v79_v13 = vld [vmem:[#allocation2 + $0x78] sm:$0xff] }
  0x34   :  { %123 = vmatmul.f32.gmra.mxu0 %v81_v15  ;;  %135 = vmatmul.f32.gmra.mxu1 %v85_v16 }
  0x3b   :  { %150 = vmatmul.f32.gmra.mxu2 %v90_v17  ;;  %162 = vmatmul.f32.gmra.mxu3 %v94_v18 }
  0x3c   :  { %126 = vmatmul.f32.gmra.mxu0 %v82_v19  ;;  %138 = vmatmul.f32.gmra.mxu1 %v86_v20 }
  0x43   :  { %153 = vmatmul.f32.gmra.mxu2 %v91_v21  ;;  %165 = vmatmul.f32.gmra.mxu3 %v95_v22 }
  0x44   :  { %129 = vmatmul.f32.gmra.mxu0 %v83_v23  ;;  %141 = vmatmul.f32.gmra.mxu1 %v87_v24 }
  0xa9   :  { %v121_v27 = vpop.f32.mrf.mxu0  ;;  %v133_v28 = vpop.f32.mrf.mxu1 }
  0xaa   :  { %v169_v29 = vadd.f32 %v121_v27, %v64_v25  ;;  %v173_v30 = vadd.f32 %v133_v28, %v68_v26 }
  0xac   :  { %186 = vst.msk [vmem:[#allocation2] sm:$0xff] %vm47_vm0, %v169_v29 }
  0xad   :  { %190 = vst.msk [vmem:[#allocation2 + $0x20] sm:$0xff] %vm47_vm0, %v173_v30 }
  0xae   :  { %v145_v33 = vpop.f32.mrf.mxu2  ;;  %v157_v34 = vpop.f32.mrf.mxu3 }
  0xaf   :  { %v177_v35 = vadd.f32 %v145_v33, %v72_v31  ;;  %v181_v36 = vadd.f32 %v157_v34, %v76_v32 }
  0xb1   :  { %194 = vst.msk [vmem:[#allocation2 + $0x40] sm:$0xff] %vm47_vm0, %v177_v35  ;;  %v124_v39 = vpop.f32.mrf.mxu0  ;;  %v136_v40 = vpop.f32.mrf.mxu1 }
  0xb2   :  { %198 = vst.msk [vmem:[#allocation2 + $0x60] sm:$0xff] %vm47_vm0, %v181_v36  ;;  %v170_v41 = vadd.f32 %v124_v39, %v65_v37  ;;  %v174_v43 = vadd.f32 %v136_v40, %v69_v38 }
  0xb3   :  { %v205_v42 = vld [vmem:[#allocation2] sm:$0xff] }
  0xb4   :  { %221 = vst.msk [vmem:[%s448_s2] sm:$0xff] %vm47_vm0, %v205_v42  ;;  %v209_v44 = vld [vmem:[#allocation2 + $0x20] sm:$0xff] }
  0xb5   :  { %225 = vst.msk [vmem:[%s448_s2 + $0x20] sm:$0xff] %vm47_vm0, %v209_v44 }
  0xb6   :  { %187 = vst.msk [vmem:[#allocation2 + $0x8] sm:$0xff] %vm47_vm0, %v170_v41  ;;  %v148_v47 = vpop.f32.mrf.mxu2  ;;  %v160_v48 = vpop.f32.mrf.mxu3 }
  0xb7   :  { %191 = vst.msk [vmem:[#allocation2 + $0x28] sm:$0xff] %vm47_vm0, %v174_v43  ;;  %v178_v49 = vadd.f32 %v148_v47, %v73_v45  ;;  %v182_v52 = vadd.f32 %v160_v48, %v77_v46 }
  0xb8   :  { %v213_v51 = vld [vmem:[#allocation2 + $0x40] sm:$0xff] }
  0xb9   :  { %229 = vst.msk [vmem:[%s448_s2 + $0x40] sm:$0xff] %vm47_vm0, %v213_v51  ;;  %v217_v53 = vld [vmem:[#allocation2 + $0x60] sm:$0xff]  ;;  %v127_v54 = vpop.f32.mrf.mxu0  ;;  %v139_v56 = vpop.f32.mrf.mxu1 }
  0xba   :  { %233 = vst.msk [vmem:[%s448_s2 + $0x60] sm:$0xff] %vm47_vm0, %v217_v53  ;;  %v171_v57 = vadd.f32 %v127_v54, %v66_v50  ;;  %v175_v58 = vadd.f32 %v139_v56, %v70_v55 }
  0xbb   :  { %195 = vst.msk [vmem:[#allocation2 + $0x48] sm:$0xff] %vm47_vm0, %v178_v49 }
  0xbc   :  { %199 = vst.msk [vmem:[#allocation2 + $0x68] sm:$0xff] %vm47_vm0, %v182_v52 }
  0xbd   :  { %v206_v61 = vld [vmem:[#allocation2 + $0x8] sm:$0xff]  ;;  %188 = vst.msk [vmem:[#allocation2 + $0x10] sm:$0xff] %vm47_vm0, %v171_v57 }
  0xbe   :  { %222 = vst.msk [vmem:[%s448_s2 + $0x8] sm:$0xff] %vm47_vm0, %v206_v61  ;;  %v210_v62 = vld [vmem:[#allocation2 + $0x28] sm:$0xff]  ;;  %v151_v63 = vpop.f32.mrf.mxu2  ;;  %v163_v0 = vpop.f32.mrf.mxu3 }
  0xbf   :  { %226 = vst.msk [vmem:[%s448_s2 + $0x28] sm:$0xff] %vm47_vm0, %v210_v62  ;;  %v179_v1 = vadd.f32 %v151_v63, %v74_v59  ;;  %v183_v2 = vadd.f32 %v163_v0, %v78_v60 }
  0xc0   :  { %192 = vst.msk [vmem:[#allocation2 + $0x30] sm:$0xff] %vm47_vm0, %v175_v58 }
  0xc1   :  { %196 = vst.msk [vmem:[#allocation2 + $0x50] sm:$0xff] %vm47_vm0, %v179_v1  ;;  %v130_v5 = vpop.f32.mrf.mxu0  ;;  %v142_v6 = vpop.f32.mrf.mxu1 }
  0xc2   :  { %v214_v7 = vld [vmem:[#allocation2 + $0x48] sm:$0xff]  ;;  %200 = vst.msk [vmem:[#allocation2 + $0x70] sm:$0xff] %vm47_vm0, %v183_v2  ;;  %v172_v8 = vadd.f32 %v130_v5, %v67_v3  ;;  %v176_v10 = vadd.f32 %v142_v6, %v71_v4 }
  0xc3   :  { %230 = vst.msk [vmem:[%s448_s2 + $0x48] sm:$0xff] %vm47_vm0, %v214_v7  ;;  %v218_v9 = vld [vmem:[#allocation2 + $0x68] sm:$0xff] }
  0xc4   :  { %234 = vst.msk [vmem:[%s448_s2 + $0x68] sm:$0xff] %vm47_vm0, %v218_v9  ;;  %v207_v11 = vld [vmem:[#allocation2 + $0x10] sm:$0xff] }
  0xc5   :  { %223 = vst.msk [vmem:[%s448_s2 + $0x10] sm:$0xff] %vm47_vm0, %v207_v11 }
  0xc6   :  { %189 = vst.msk [vmem:[#allocation2 + $0x18] sm:$0xff] %vm47_vm0, %v172_v8  ;;  %v154_v14 = vpop.f32.mrf.mxu2  ;;  %v166_v15 = vpop.f32.mrf.mxu3 }
  0xc7   :  { %v211_v16 = vld [vmem:[#allocation2 + $0x30] sm:$0xff]  ;;  %193 = vst.msk [vmem:[#allocation2 + $0x38] sm:$0xff] %vm47_vm0, %v176_v10  ;;  %v180_v17 = vadd.f32 %v154_v14, %v75_v12  ;;  %v184_v19 = vadd.f32 %v166_v15, %v79_v13 }
  0xc8   :  { %227 = vst.msk [vmem:[%s448_s2 + $0x30] sm:$0xff] %vm47_vm0, %v211_v16  ;;  %v215_v18 = vld [vmem:[#allocation2 + $0x50] sm:$0xff] }
  0xc9   :  { %231 = vst.msk [vmem:[%s448_s2 + $0x50] sm:$0xff] %vm47_vm0, %v215_v18  ;;  %v219_v20 = vld [vmem:[#allocation2 + $0x70] sm:$0xff] }
  0xca   :  { %235 = vst.msk [vmem:[%s448_s2 + $0x70] sm:$0xff] %vm47_vm0, %v219_v20 }
  0xcb   :  { %197 = vst.msk [vmem:[#allocation2 + $0x58] sm:$0xff] %vm47_vm0, %v180_v17 }
  0xcc   :  { %201 = vst.msk [vmem:[#allocation2 + $0x78] sm:$0xff] %vm47_vm0, %v184_v19 }
  0xcd   :  { %v208_v21 = vld [vmem:[#allocation2 + $0x18] sm:$0xff] }
  0xce   :  { %224 = vst.msk [vmem:[%s448_s2 + $0x18] sm:$0xff] %vm47_vm0, %v208_v21  ;;  %v212_v22 = vld [vmem:[#allocation2 + $0x38] sm:$0xff] }
  0xcf   :  { %228 = vst.msk [vmem:[%s448_s2 + $0x38] sm:$0xff] %vm47_vm0, %v212_v22 }
  0xd2   :  { %v216_v23 = vld [vmem:[#allocation2 + $0x58] sm:$0xff] }
  0xd3   :  { %232 = vst.msk [vmem:[%s448_s2 + $0x58] sm:$0xff] %vm47_vm0, %v216_v23  ;;  %v220_v24 = vld [vmem:[#allocation2 + $0x78] sm:$0xff] }
  0xd4   :  { %236 = vst.msk [vmem:[%s448_s2 + $0x78] sm:$0xff] %vm47_vm0, %v220_v24 }
  0xd5   :  { %241 = vsyncpa [#allocation4], 1 }
  0xd6   :  { %242 = vsyncpa [#allocation6], 1 }

</bundles_post_ra>
